<compile_context>
chip_gen: v5e
topology: v5e:2x2
jax: 0.10.0
libtpu: 0.0.40
codegen_flags: <defaults>
</compile_context>

<pallas_src>
import jax
import jax.numpy as jnp
from jax import lax
from jax.experimental import pallas as pl
from jax.experimental.pallas import tpu as pltpu

BN_EPS = 1e-5


def _make_psconv_kernel(B, W, H, C, Cout):
    Cin = C + 4
    R = B * W              # rows : flattened (batch, width)
    L = H * Cin            # lanes: h-major / channel-minor packing (== 128 here)

    def kernel(x_ref, prm_ref, P_ref, pw_ref, out_ref):
        f32 = jnp.float32

        # one load for every per-lane parameter row (taps/bn/pw_b/pos coeffs)
        prm = prm_ref[...]                                      # (16, L)

        # ---- row coordinates (2-D iota, W-edge + batch-seam masks) ---------
        row = lax.broadcasted_iota(jnp.int32, (R, 1), 0)
        w_of_row = row % W
        w_has_prev = w_of_row != 0          # also blocks the flattened batch seam
        w_has_next = w_of_row != W - 1

        # ---- positional channels + 64->128 lane expansion -------------------
        # pos[r, l] = pos_a[l]*(w+1) + pos_k[l]; data channels scattered to the
        # (R, L) lane layout with one permutation matmul on the idle MXU.
        wr = (w_of_row + 1).astype(f32)                          # (R, 1)
        pos = prm[12:13, :] * wr + prm[13:14, :]                 # (R, L)
        data = jnp.dot(x_ref[...].astype(f32), P_ref[...],
                       preferred_element_type=f32)               # (R, L)
        xin = pos + data

        # ---- depthwise 3x3 conv ---------------------------------------------
        # H-direction neighbours: 2 lane rolls total; the H-edge zero padding is
        # folded into the tap rows host-side, so no selects are needed here.
        x_hm = pltpu.roll(xin, Cin, axis=1)        # value at h-1
        x_hp = pltpu.roll(xin, L - Cin, axis=1)    # value at h+1

        def trow(k):                                # (1, L) tap row, in-register
            return prm[k:k + 1, :]

        t = [x_hm * trow(3 * di) + xin * trow(3 * di + 1) + x_hp * trow(3 * di + 2)
             for di in range(3)]

        # W-direction neighbours: 2 sublane rolls on the combined partials only
        # (4 XLU rolls total for the whole 3x3 stencil).
        acc = (jnp.where(w_has_prev, pltpu.roll(t[0], 1, axis=0), 0.0)
               + t[1]
               + jnp.where(w_has_next, pltpu.roll(t[2], R - 1, axis=0), 0.0))

        # ---- BatchNorm2d, training-mode forward (batch statistics) ----------
        # per-lane sums over rows, then one circular lane-roll tree on the
        # stacked (2, L) stats reduces the H lane replicas of each channel.
        s1 = jnp.sum(acc, axis=0, keepdims=True)                 # (1, L)
        s2 = jnp.sum(acc * acc, axis=0, keepdims=True)           # (1, L)
        stats = jnp.concatenate([s1, s2], axis=0)                # (2, L)
        step = Cin
        while step < L:
            stats = stats + pltpu.roll(stats, step, axis=1)
            step *= 2
        inv_n = 1.0 / float(R * H)                               # elems per channel
        mean = stats[0:1, :] * inv_n
        var = jnp.maximum(stats[1:2, :] * inv_n - mean * mean, 0.0)
        scale = prm[9:10, :] * lax.rsqrt(var + BN_EPS)
        shift = prm[10:11, :] - mean * scale
        yn = acc * scale + shift                                 # single FMA pass

        # ---- mish: tanh(softplus(x)) * x = x*(e^2+2e)/(e^2+2e+2), e=exp(x) --
        e = jnp.exp(jnp.minimum(yn, 30.0))
        u = e * (e + 2.0)
        den = u + 2.0
        r = pl.reciprocal(den, approx=True)
        r = r * (2.0 - den * r)                                  # one Newton step
        act = yn * (u * r)

        # ---- pointwise 1x1 conv (block-diagonal weight, one MXU matmul) -----
        out = jnp.dot(act, pw_ref[...], preferred_element_type=f32) + prm[11:12, :]
        out_ref[...] = out.astype(out_ref.dtype)                 # full 128-lane stores

    return kernel


def pack_params(dw, bn_w, bn_b, pw_w, pw_b, *, W, H):
    """Precompute all lane-tiled kernel constants ONCE (hoisted out of forward)."""
    f32 = jnp.float32
    Cin = dw.shape[1]
    Cout = pw_w.shape[1]
    C = Cin - 4
    L = H * Cin

    lane = jnp.arange(L)
    h_of_lane = lane // Cin
    c_of_lane = lane % Cin

    # depthwise taps tiled to the lane layout, H-edge zero padding folded in
    taps = jnp.tile(dw.astype(f32), (1, H))                       # (9, L)
    row_is_prev = jnp.array([1, 0, 0, 1, 0, 0, 1, 0, 0], f32).reshape(9, 1)
    row_is_next = jnp.array([0, 0, 1, 0, 0, 1, 0, 0, 1], f32).reshape(9, 1)
    tap_mask = (1.0
                - row_is_prev * (h_of_lane == 0).astype(f32)[None, :]
                - row_is_next * (h_of_lane == H - 1).astype(f32)[None, :])
    taps = taps * tap_mask

    # positional-channel coefficients: pos = pos_a * (w+1) + pos_k
    pos_a = jnp.where(c_of_lane == 0, 1.0,
                      jnp.where(c_of_lane == 1, 2.0 / W, 0.0)).astype(f32)
    pos_k = (jnp.where(c_of_lane == 1, -1.0, 0.0)
             + jnp.where(c_of_lane == 2, (h_of_lane + 1).astype(f32), 0.0)
             + jnp.where(c_of_lane == 3, 2.0 * (h_of_lane + 1) / H - 1.0, 0.0)
             ).astype(f32)

    prm = jnp.zeros((16, L), f32)
    prm = prm.at[0:9, :].set(taps)
    prm = prm.at[9, :].set(jnp.tile(bn_w.reshape(-1).astype(f32), H))
    prm = prm.at[10, :].set(jnp.tile(bn_b.reshape(-1).astype(f32), H))
    prm = prm.at[11, :].set(jnp.tile(pw_b.reshape(-1).astype(f32), H))
    prm = prm.at[12, :].set(pos_a)
    prm = prm.at[13, :].set(pos_k)

    # lane-expansion permutation: source lane (h*C + c) -> target lane (h*Cin + 4 + c)
    P = jnp.zeros((H * C, L), f32)
    src = jnp.arange(H * C)
    dst = (src // C) * Cin + 4 + (src % C)
    P = P.at[src, dst].set(1.0)

    # block-diagonal pointwise weight: kron(I_H, pw_w)  -> (H*Cin, H*Cout)
    pw_blk = jnp.kron(jnp.eye(H, dtype=f32), pw_w.astype(f32))

    return prm, P, pw_blk


@jax.jit
def psconv_forward(x_nchw, prm, P, pw_blk):
    """x_nchw: (B, C, W, H) float32 -> (B, Cout, W, H) float32."""
    B, C, W, H = x_nchw.shape
    Cin = C + 4
    Cout = pw_blk.shape[1] // H

    # packed single-block kernel is specialised to a fully dense 128-lane axis
    assert H * Cin == 128 and H * Cout == 128 and (H & (H - 1)) == 0, (
        "kernel specialised to H*(C+4) == H*Cout == 128 with H a power of two")

    # only the real data channels are packed / DMA'd: rows = (b, w), lanes = h*C + c
    x_data = jnp.transpose(x_nchw, (0, 2, 3, 1)).reshape(B * W, H * C)

    out2 = pl.pallas_call(
        _make_psconv_kernel(B, W, H, C, Cout),
        out_shape=jax.ShapeDtypeStruct((B * W, H * Cout), jnp.float32),
        in_specs=[pl.BlockSpec(memory_space=pltpu.MemorySpace.VMEM)] * 4,
        out_specs=pl.BlockSpec(memory_space=pltpu.MemorySpace.VMEM),
    )(x_data, prm, P, pw_blk)

    # (B*W, H*Cout) -> (B, W, H, Cout) -> NCHW
    return jnp.transpose(out2.reshape(B, W, H, Cout), (0, 3, 1, 2))


def reference(x_nchw, dw, bn_w, bn_b, pw_w, pw_b):
    """Pure-JAX reference (NCHW, real conv primitives) for validation."""
    B, C, W, H = x_nchw.shape
    dtype = x_nchw.dtype
    Cin = C + 4

    wr = jnp.broadcast_to(jnp.arange(1, W + 1, dtype=dtype).reshape(1, 1, W, 1), (B, 1, W, H))
    hr = jnp.broadcast_to(jnp.arange(1, H + 1, dtype=dtype).reshape(1, 1, 1, H), (B, 1, W, H))
    xin = jnp.concatenate([wr, 2.0 * wr / W - 1.0, hr, 2.0 * hr / H - 1.0, x_nchw], axis=1)

    dw_oihw = jnp.transpose(dw.reshape(3, 3, Cin), (2, 0, 1))[:, None, :, :]   # (Cin,1,3,3)
    y = lax.conv_general_dilated(
        xin, dw_oihw, window_strides=(1, 1), padding=((1, 1), (1, 1)),
        feature_group_count=Cin, dimension_numbers=("NCHW", "OIHW", "NCHW"))

    mean = jnp.mean(y, axis=(0, 2, 3), keepdims=True)
    var = jnp.mean((y - mean) ** 2, axis=(0, 2, 3), keepdims=True)
    yn = (y - mean) / jnp.sqrt(var + BN_EPS)
    yn = yn * bn_w.reshape(1, Cin, 1, 1) + bn_b.reshape(1, Cin, 1, 1)

    act = jnp.tanh(jnp.log1p(jnp.exp(yn))) * yn
    out = jnp.einsum("bchw,co->bohw", act, pw_w) + pw_b.reshape(1, -1, 1, 1)
    return out


if __name__ == "__main__":
    # PositionalSeparableConvolution(in_features=4, out_features=8) at small shapes.
    B, C, W, H = 2, 4, 16, 16
    Cin = C + 4          # positional channels are concatenated before the separable conv
    Cout = 8

    key = jax.random.PRNGKey(0)
    kx, k1, k2, k3, k4, k5 = jax.random.split(key, 6)

    x = jax.random.normal(kx, (B, C, W, H), jnp.float32)

    # deterministic synthetic parameters (shapes follow the module's __init__)
    dw = 0.1 * jax.random.normal(k1, (9, Cin), jnp.float32)          # depthwise 3x3, (tap, channel)
    bn_w = 1.0 + 0.1 * jax.random.normal(k2, (1, Cin), jnp.float32)  # BatchNorm2d.weight
    bn_b = 0.1 * jax.random.normal(k3, (1, Cin), jnp.float32)        # BatchNorm2d.bias
    pw_w = 0.1 * jax.random.normal(k4, (Cin, Cout), jnp.float32)     # pointwise 1x1 conv weight
    pw_b = 0.1 * jax.random.normal(k5, (1, Cout), jnp.float32)       # pointwise bias

    # one-time parameter packing (hoisted out of the per-call path)
    prm, P, pw_blk = pack_params(dw, bn_w, bn_b, pw_w, pw_b, W=W, H=H)

    out = jax.block_until_ready(psconv_forward(x, prm, P, pw_blk))
    ref = jax.block_until_ready(reference(x, dw, bn_w, bn_b, pw_w, pw_b))

    assert out.shape == (B, Cout, W, H), out.shape
    max_err = float(jnp.max(jnp.abs(out - ref)))
    assert bool(jnp.allclose(out, ref, atol=2e-4, rtol=2e-4)), max_err

    print("KERNEL_OK")
</pallas_src>

<mosaic_0001>
module attributes {stable_mosaic.version = 11 : i64} {
  func.func @kernel(%arg0: memref<32x64xf32, #tpu.memory_space<vmem>>, %arg1: memref<16x128xf32, #tpu.memory_space<vmem>>, %arg2: memref<64x128xf32, #tpu.memory_space<vmem>>, %arg3: memref<128x128xf32, #tpu.memory_space<vmem>>, %arg4: memref<32x128xf32, #tpu.memory_space<vmem>>) attributes {dimension_semantics = [], scalar_prefetch = 0 : i64, scratch_operands = 0 : i64, tpu.core_type = #tpu.core_type<tc>} {
    %c0 = arith.constant 0 : index
    %c0_0 = arith.constant 0 : index
    %0 = vector.load %arg1[%c0, %c0_0] : memref<16x128xf32, #tpu.memory_space<vmem>>, vector<16x128xf32>
    %1 = tpu.iota {dimensions = array<i32: 0>} : vector<32x1xi32>
    %c16_i32 = arith.constant 16 : i32
    %c0_i32 = arith.constant 0 : i32
    %2 = arith.cmpi eq, %c16_i32, %c0_i32 : i32
    %c1_i32 = arith.constant 1 : i32
    %3 = arith.select %2, %c1_i32, %c16_i32 : i32
    %4 = vector.broadcast %3 : i32 to vector<32x1xi32>
    %5 = arith.remsi %1, %4 : vector<32x1xi32>
    %c0_i32_1 = arith.constant 0 : i32
    %6 = vector.broadcast %c0_i32_1 : i32 to vector<32x1xi32>
    %7 = arith.cmpi ne, %5, %6 : vector<32x1xi32>
    %c0_i32_2 = arith.constant 0 : i32
    %8 = vector.broadcast %c0_i32_2 : i32 to vector<32x1xi32>
    %9 = arith.cmpi slt, %5, %8 : vector<32x1xi32>
    %c0_i32_3 = arith.constant 0 : i32
    %10 = arith.cmpi slt, %3, %c0_i32_3 : i32
    %11 = vector.broadcast %10 : i1 to vector<32x1xi1>
    %12 = vector.broadcast %11 : vector<32x1xi1> to vector<32x1xi1>
    %13 = arith.xori %9, %12 : vector<32x1xi1>
    %14 = arith.andi %13, %7 : vector<32x1xi1>
    %15 = vector.broadcast %3 : i32 to vector<32x1xi32>
    %16 = arith.addi %5, %15 : vector<32x1xi32>
    %17 = arith.select %14, %16, %5 : vector<32x1xi1>, vector<32x1xi32>
    %c0_i32_4 = arith.constant 0 : i32
    %18 = vector.broadcast %c0_i32_4 : i32 to vector<32x1xi32>
    %19 = arith.cmpi ne, %17, %18 : vector<32x1xi32>
    %c15_i32 = arith.constant 15 : i32
    %20 = vector.broadcast %c15_i32 : i32 to vector<32x1xi32>
    %21 = arith.cmpi ne, %17, %20 : vector<32x1xi32>
    %c1_i32_5 = arith.constant 1 : i32
    %22 = vector.broadcast %c1_i32_5 : i32 to vector<32x1xi32>
    %23 = arith.addi %17, %22 : vector<32x1xi32>
    %24 = arith.sitofp %23 : vector<32x1xi32> to vector<32x1xf32>
    %25 = vector.extract_strided_slice %0 {offsets = [12, 0], sizes = [1, 128], strides = [1, 1]} : vector<16x128xf32> to vector<1x128xf32>
    %26 = vector.broadcast %25 : vector<1x128xf32> to vector<32x128xf32>
    %27 = vector.broadcast %24 : vector<32x1xf32> to vector<32x128xf32>
    %28 = arith.mulf %26, %27 : vector<32x128xf32>
    %29 = vector.extract_strided_slice %0 {offsets = [13, 0], sizes = [1, 128], strides = [1, 1]} : vector<16x128xf32> to vector<1x128xf32>
    %30 = vector.broadcast %29 : vector<1x128xf32> to vector<32x128xf32>
    %31 = arith.addf %28, %30 : vector<32x128xf32>
    %c0_6 = arith.constant 0 : index
    %c0_7 = arith.constant 0 : index
    %32 = vector.load %arg0[%c0_6, %c0_7] : memref<32x64xf32, #tpu.memory_space<vmem>>, vector<32x64xf32>
    %c0_8 = arith.constant 0 : index
    %c0_9 = arith.constant 0 : index
    %33 = vector.load %arg2[%c0_8, %c0_9] : memref<64x128xf32, #tpu.memory_space<vmem>>, vector<64x128xf32>
    %cst = arith.constant dense<0.000000e+00> : vector<32x128xf32>
    %34 = tpu.matmul %32, %33, %cst {dimension_numbers = #tpu.dot_dimension_numbers<[1], [0], [0], [1], [0, 0, 1, 1], [], []>} : vector<32x64xf32>, vector<64x128xf32>, vector<32x128xf32> -> vector<32x128xf32>
    %35 = arith.addf %31, %34 : vector<32x128xf32>
    %c8_i32 = arith.constant 8 : i32
    %36 = tpu.dynamic_rotate %35 by %c8_i32 dim 1 : vector<32x128xf32>, i32 -> vector<32x128xf32>
    %c120_i32 = arith.constant 120 : i32
    %37 = tpu.dynamic_rotate %35 by %c120_i32 dim 1 : vector<32x128xf32>, i32 -> vector<32x128xf32>
    %38 = vector.extract_strided_slice %0 {offsets = [0, 0], sizes = [1, 128], strides = [1, 1]} : vector<16x128xf32> to vector<1x128xf32>
    %39 = vector.broadcast %38 : vector<1x128xf32> to vector<32x128xf32>
    %40 = arith.mulf %36, %39 : vector<32x128xf32>
    %41 = vector.extract_strided_slice %0 {offsets = [1, 0], sizes = [1, 128], strides = [1, 1]} : vector<16x128xf32> to vector<1x128xf32>
    %42 = vector.broadcast %41 : vector<1x128xf32> to vector<32x128xf32>
    %43 = arith.mulf %35, %42 : vector<32x128xf32>
    %44 = arith.addf %40, %43 : vector<32x128xf32>
    %45 = vector.extract_strided_slice %0 {offsets = [2, 0], sizes = [1, 128], strides = [1, 1]} : vector<16x128xf32> to vector<1x128xf32>
    %46 = vector.broadcast %45 : vector<1x128xf32> to vector<32x128xf32>
    %47 = arith.mulf %37, %46 : vector<32x128xf32>
    %48 = arith.addf %44, %47 : vector<32x128xf32>
    %49 = vector.extract_strided_slice %0 {offsets = [3, 0], sizes = [1, 128], strides = [1, 1]} : vector<16x128xf32> to vector<1x128xf32>
    %50 = vector.broadcast %49 : vector<1x128xf32> to vector<32x128xf32>
    %51 = arith.mulf %36, %50 : vector<32x128xf32>
    %52 = vector.extract_strided_slice %0 {offsets = [4, 0], sizes = [1, 128], strides = [1, 1]} : vector<16x128xf32> to vector<1x128xf32>
    %53 = vector.broadcast %52 : vector<1x128xf32> to vector<32x128xf32>
    %54 = arith.mulf %35, %53 : vector<32x128xf32>
    %55 = arith.addf %51, %54 : vector<32x128xf32>
    %56 = vector.extract_strided_slice %0 {offsets = [5, 0], sizes = [1, 128], strides = [1, 1]} : vector<16x128xf32> to vector<1x128xf32>
    %57 = vector.broadcast %56 : vector<1x128xf32> to vector<32x128xf32>
    %58 = arith.mulf %37, %57 : vector<32x128xf32>
    %59 = arith.addf %55, %58 : vector<32x128xf32>
    %60 = vector.extract_strided_slice %0 {offsets = [6, 0], sizes = [1, 128], strides = [1, 1]} : vector<16x128xf32> to vector<1x128xf32>
    %61 = vector.broadcast %60 : vector<1x128xf32> to vector<32x128xf32>
    %62 = arith.mulf %36, %61 : vector<32x128xf32>
    %63 = vector.extract_strided_slice %0 {offsets = [7, 0], sizes = [1, 128], strides = [1, 1]} : vector<16x128xf32> to vector<1x128xf32>
    %64 = vector.broadcast %63 : vector<1x128xf32> to vector<32x128xf32>
    %65 = arith.mulf %35, %64 : vector<32x128xf32>
    %66 = arith.addf %62, %65 : vector<32x128xf32>
    %67 = vector.extract_strided_slice %0 {offsets = [8, 0], sizes = [1, 128], strides = [1, 1]} : vector<16x128xf32> to vector<1x128xf32>
    %68 = vector.broadcast %67 : vector<1x128xf32> to vector<32x128xf32>
    %69 = arith.mulf %37, %68 : vector<32x128xf32>
    %70 = arith.addf %66, %69 : vector<32x128xf32>
    %c1_i32_10 = arith.constant 1 : i32
    %71 = tpu.dynamic_rotate %48 by %c1_i32_10 dim 0 : vector<32x128xf32>, i32 -> vector<32x128xf32>
    %cst_11 = arith.constant 0.000000e+00 : f32
    %72 = vector.shape_cast %19 : vector<32x1xi1> to vector<32x1xi1>
    %73 = vector.broadcast %72 : vector<32x1xi1> to vector<32x128xi1>
    %74 = vector.broadcast %cst_11 : f32 to vector<32x128xf32>
    %75 = arith.select %73, %71, %74 : vector<32x128xi1>, vector<32x128xf32>
    %76 = arith.addf %75, %59 : vector<32x128xf32>
    %c31_i32 = arith.constant 31 : i32
    %77 = tpu.dynamic_rotate %70 by %c31_i32 dim 0 : vector<32x128xf32>, i32 -> vector<32x128xf32>
    %cst_12 = arith.constant 0.000000e+00 : f32
    %78 = vector.shape_cast %21 : vector<32x1xi1> to vector<32x1xi1>
    %79 = vector.broadcast %78 : vector<32x1xi1> to vector<32x128xi1>
    %80 = vector.broadcast %cst_12 : f32 to vector<32x128xf32>
    %81 = arith.select %79, %77, %80 : vector<32x128xi1>, vector<32x128xf32>
    %82 = arith.addf %76, %81 : vector<32x128xf32>
    %cst_13 = arith.constant dense<0.000000e+00> : vector<128xf32>
    %83 = vector.multi_reduction <add>, %82, %cst_13 [0] : vector<32x128xf32> to vector<128xf32>
    %84 = vector.shape_cast %83 : vector<128xf32> to vector<1x128xf32>
    %85 = arith.mulf %82, %82 : vector<32x128xf32>
    %cst_14 = arith.constant dense<0.000000e+00> : vector<128xf32>
    %86 = vector.multi_reduction <add>, %85, %cst_14 [0] : vector<32x128xf32> to vector<128xf32>
    %87 = vector.shape_cast %86 : vector<128xf32> to vector<1x128xf32>
    %88 = tpu.concatenate %84, %87 in 0 : vector<1x128xf32>, vector<1x128xf32> -> vector<2x128xf32>
    %c8_i32_15 = arith.constant 8 : i32
    %89 = tpu.dynamic_rotate %88 by %c8_i32_15 dim 1 : vector<2x128xf32>, i32 -> vector<2x128xf32>
    %90 = arith.addf %88, %89 : vector<2x128xf32>
    %c16_i32_16 = arith.constant 16 : i32
    %91 = tpu.dynamic_rotate %90 by %c16_i32_16 dim 1 : vector<2x128xf32>, i32 -> vector<2x128xf32>
    %92 = arith.addf %90, %91 : vector<2x128xf32>
    %c32_i32 = arith.constant 32 : i32
    %93 = tpu.dynamic_rotate %92 by %c32_i32 dim 1 : vector<2x128xf32>, i32 -> vector<2x128xf32>
    %94 = arith.addf %92, %93 : vector<2x128xf32>
    %c64_i32 = arith.constant 64 : i32
    %95 = tpu.dynamic_rotate %94 by %c64_i32 dim 1 : vector<2x128xf32>, i32 -> vector<2x128xf32>
    %96 = arith.addf %94, %95 : vector<2x128xf32>
    %97 = vector.extract_strided_slice %96 {offsets = [0, 0], sizes = [1, 128], strides = [1, 1]} : vector<2x128xf32> to vector<1x128xf32>
    %cst_17 = arith.constant 0.001953125 : f32
    %98 = vector.broadcast %cst_17 : f32 to vector<1x128xf32>
    %99 = arith.mulf %97, %98 : vector<1x128xf32>
    %100 = vector.extract_strided_slice %96 {offsets = [1, 0], sizes = [1, 128], strides = [1, 1]} : vector<2x128xf32> to vector<1x128xf32>
    %cst_18 = arith.constant 0.001953125 : f32
    %101 = vector.broadcast %cst_18 : f32 to vector<1x128xf32>
    %102 = arith.mulf %100, %101 : vector<1x128xf32>
    %103 = arith.mulf %99, %99 : vector<1x128xf32>
    %104 = arith.subf %102, %103 : vector<1x128xf32>
    %cst_19 = arith.constant 0.000000e+00 : f32
    %105 = vector.broadcast %cst_19 : f32 to vector<1x128xf32>
    %106 = arith.maximumf %104, %105 : vector<1x128xf32>
    %107 = vector.extract_strided_slice %0 {offsets = [9, 0], sizes = [1, 128], strides = [1, 1]} : vector<16x128xf32> to vector<1x128xf32>
    %cst_20 = arith.constant 9.99999974E-6 : f32
    %108 = vector.broadcast %cst_20 : f32 to vector<1x128xf32>
    %109 = arith.addf %106, %108 : vector<1x128xf32>
    %110 = math.rsqrt %109 : vector<1x128xf32>
    %111 = arith.mulf %107, %110 : vector<1x128xf32>
    %112 = vector.extract_strided_slice %0 {offsets = [10, 0], sizes = [1, 128], strides = [1, 1]} : vector<16x128xf32> to vector<1x128xf32>
    %113 = arith.mulf %99, %111 : vector<1x128xf32>
    %114 = arith.subf %112, %113 : vector<1x128xf32>
    %115 = vector.broadcast %111 : vector<1x128xf32> to vector<32x128xf32>
    %116 = arith.mulf %82, %115 : vector<32x128xf32>
    %117 = vector.broadcast %114 : vector<1x128xf32> to vector<32x128xf32>
    %118 = arith.addf %116, %117 : vector<32x128xf32>
    %cst_21 = arith.constant 3.000000e+01 : f32
    %119 = vector.broadcast %cst_21 : f32 to vector<32x128xf32>
    %120 = arith.minimumf %118, %119 : vector<32x128xf32>
    %121 = math.exp %120 : vector<32x128xf32>
    %cst_22 = arith.constant 2.000000e+00 : f32
    %122 = vector.broadcast %cst_22 : f32 to vector<32x128xf32>
    %123 = arith.addf %121, %122 : vector<32x128xf32>
    %124 = arith.mulf %121, %123 : vector<32x128xf32>
    %cst_23 = arith.constant 2.000000e+00 : f32
    %125 = vector.broadcast %cst_23 : f32 to vector<32x128xf32>
    %126 = arith.addf %124, %125 : vector<32x128xf32>
    %127 = tpu.reciprocal %126 {approx = true} : vector<32x128xf32> -> vector<32x128xf32>
    %128 = arith.mulf %126, %127 : vector<32x128xf32>
    %cst_24 = arith.constant 2.000000e+00 : f32
    %129 = vector.broadcast %cst_24 : f32 to vector<32x128xf32>
    %130 = arith.subf %129, %128 : vector<32x128xf32>
    %131 = arith.mulf %127, %130 : vector<32x128xf32>
    %132 = arith.mulf %124, %131 : vector<32x128xf32>
    %133 = arith.mulf %118, %132 : vector<32x128xf32>
    %c0_25 = arith.constant 0 : index
    %c0_26 = arith.constant 0 : index
    %134 = vector.load %arg3[%c0_25, %c0_26] : memref<128x128xf32, #tpu.memory_space<vmem>>, vector<128x128xf32>
    %cst_27 = arith.constant dense<0.000000e+00> : vector<32x128xf32>
    %135 = tpu.matmul %133, %134, %cst_27 {dimension_numbers = #tpu.dot_dimension_numbers<[1], [0], [0], [1], [0, 0, 1, 1], [], []>} : vector<32x128xf32>, vector<128x128xf32>, vector<32x128xf32> -> vector<32x128xf32>
    %136 = vector.extract_strided_slice %0 {offsets = [11, 0], sizes = [1, 128], strides = [1, 1]} : vector<16x128xf32> to vector<1x128xf32>
    %137 = vector.broadcast %136 : vector<1x128xf32> to vector<32x128xf32>
    %138 = arith.addf %135, %137 : vector<32x128xf32>
    %c0_28 = arith.constant 0 : index
    %c0_29 = arith.constant 0 : index
    %139 = vector.load %arg4[%c0_28, %c0_29] : memref<32x128xf32, #tpu.memory_space<vmem>>, vector<32x128xf32>
    tpu.vector_store %arg4[%c0_28, %c0_29], %138 {strides = array<i32>} : memref<32x128xf32, #tpu.memory_space<vmem>>, vector<32x128xf32>,
    return
  }
}

</mosaic_0001>

<bundles_post_ra>
// kernel: psconv_forward.1
= control target key start
LH: loop header
LB: loop body
LE: loop exit
PB: predicated region body
PF: predicated region fallthrough
CT: control target
= control target key end

     0   :  { %vm110_vm0 = vcmask 523264   ;;  %v19_v12 = vlaneseq  ;;  %s525_s15 = smov 120   ;;  %vm313_vm7 = vcmask 1040384   ;;  %s527_s16 = smov 16   ;;  %s780_s2 = inlined_call_operand.vmem [shape: f32[64,128], index: 2, kind: input, shape index: {}]   ;;  %s781_s0 = inlined_call_operand.vmem [shape: f32[32,64], index: 0, kind: input, shape index: {}]   ;;  %s782_s1 = inlined_call_operand.vmem [shape: f32[16,128], index: 1, kind: input, shape index: {}]   ;;  %s783_s3 = inlined_call_operand.vmem [shape: f32[128,128], index: 3, kind: input, shape index: {}]   ;;  %s784_s4 = inlined_call_operand.vmem [shape: f32[32,128], index: 4, kind: output, shape index: {}]  }
   0x1   :  { %v109_v0 = vld [vmem:[%s780_s2 + $0x38] sm:$0xff]  ;;  %v108_v1 = vld [vmem:[%s780_s2 + $0x30] sm:$0xff]  ;;  %v107_v2 = vld [vmem:[%s780_s2 + $0x28] sm:$0xff]  ;;  %s528_s17 = smov 32   ;;  %s529_s18 = smov 64  }
   0x2   :  { %131 = vmatpush.msra.mxu0 %v109_v0  ;;  %v106_v3 = vld [vmem:[%s780_s2 + $0x20] sm:$0xff]  ;;  %v105_v4 = vld [vmem:[%s780_s2 + $0x18] sm:$0xff]  ;;  %v104_v5 = vld [vmem:[%s780_s2 + $0x10] sm:$0xff]  ;;  %v591_v13 = vshrl.u32 %v19_v12, 7 }
   0x3   :  { %v103_v6 = vld [vmem:[%s780_s2 + $0x8] sm:$0xff]  ;;  %v102_v7 = vld [vmem:[%s780_s2] sm:$0xff]  ;;  %v100_v10 = vld [vmem:[%s781_s0 + $0x10] sm:$0xff] }
   0x4   :  { %132 = vmatpush.msra.mxu0 %v108_v1  ;;  %v98_v8 = vld [vmem:[%s781_s0] sm:$0xff]  ;;  %v99_v9 = vld [vmem:[%s781_s0 + $0x8] sm:$0xff]  ;;  %v101_v11 = vld [vmem:[%s781_s0 + $0x18] sm:$0xff]  ;;  %v28_v14 = vand.u32 15, %v591_v13  ;;  %v597_v16 = vadd.s32 8, %v591_v13  ;;  %v610_v24 = vadd.s32 16, %v591_v13 }
   0x5   :  { %v602_v17 = vld [vmem:[%s782_s1 + $0x8] sm:$0xff]  ;;  %v17_v25 = vld [vmem:[%s782_s1] sm:$0xff]  ;;  %v619_v36 = vadd.s32 24, %v591_v13  ;;  %s526_s1 = smov 8   ;;  %vm245_vm3 = vcmp.lt.s32.totalorder %v591_v13, 1  ;;  %vm270_vm4 = vcmp.lt.s32.totalorder %v591_v13, 7 }
   0x6   :  { %133 = vmatpush.msra.mxu0 %v107_v2  ;;  %v80_v15 = vadd.s32 1, %v28_v14  ;;  %v88_v19 = vperm.slane %v602_v17, 4  ;;  %v35_v20 = vand.u32 15, %v597_v16  ;;  %v93_v22 = vperm.slane %v602_v17, 5 }
   0x7   :  { %v42_v28 = vand.u32 15, %v610_v24  ;;  %v177_v29 = vperm.slane %v17_v25, 1  ;;  %v200_v30 = vperm.slane %v17_v25, 4  ;;  %v223_v31 = vperm.slane %v17_v25, 7 }
   0x8   :  { %134 = vmatpush.msra.mxu0 %v106_v3  ;;  %v84_v18 = vcvt.s32.f32 %v80_v15  ;;  %v81_v23 = vadd.s32 1, %v35_v20  ;;  %v49_v42 = vand.u32 15, %v619_v36  ;;  %v172_v0 = vperm.slane %v17_v25, 0 }
   0x9   :  { %v82_v35 = vadd.s32 1, %v42_v28  ;;  %v195_v1 = vperm.slane %v17_v25, 3  ;;  %v218_v2 = vperm.slane %v17_v25, 6  ;;  %v632_v3 = vperm.slane %v17_v25, 2 }
   0xa   :  { %135 = vmatpush.msra.mxu0 %v105_v4  ;;  %v89_v21 = vmul.f32 %v88_v19, %v84_v18  ;;  %v85_v27 = vcvt.s32.f32 %v81_v23  ;;  %v83_v46 = vadd.s32 1, %v49_v42  ;;  %v634_v4 = vperm.slane %v17_v25, 5 }
   0xb   :  { %v86_v41 = vcvt.s32.f32 %v82_v35  ;;  %vm647_vm1 = vcmp.ne.s32.totalorder %v28_v14, 0  ;;  %vm653_vm2 = vcmp.ne.s32.totalorder %v49_v42, 15  ;;  %vm74_vm5 = vcmp.ne.s32.totalorder %v42_v28, 0 }
   0xc   :  { %136 = vmatpush.msra.mxu0 %v104_v5  ;;  %v94_v26 = vadd.f32 %v93_v22, %v89_v21  ;;  %v90_v34 = vmul.f32 %v88_v19, %v85_v27  ;;  %v87_v51 = vcvt.s32.f32 %v83_v46  ;;  %vm77_vm6 = vcmp.ne.s32.totalorder %v35_v20, 15 }
   0xd   :  { %v91_v45 = vmul.f32 %v88_v19, %v86_v41 }
   0xe   :  { %137 = vmatpush.msra.mxu0 %v103_v6  ;;  %v95_v40 = vadd.f32 %v93_v22, %v90_v34  ;;  %v92_v54 = vmul.f32 %v88_v19, %v87_v51 }
   0xf   :  { %v96_v50 = vadd.f32 %v93_v22, %v91_v45 }
  0x10   :  { %138 = vmatpush.msra.mxu0 %v102_v7  ;;  %v97_v58 = vadd.f32 %v93_v22, %v92_v54 }
  0x11   :  { %466 = vmatmul.msk.f32.vlgmr.msra.gmra.mxu0 %vm110_vm0, %v98_v8 }
  0x19   :  { %467 = vmatmul.msk.f32.gmra.mxu0 %vm110_vm0, %v99_v9 }
  0x21   :  { %468 = vmatmul.msk.f32.gmra.mxu0 %vm110_vm0, %v100_v10 }
  0x29   :  { %469 = vmatmul.msk.f32.gmra.mxu0 %vm110_vm0, %v101_v11 }
  0x8e   :  { %v140_v32 = vpop.f32.mrf.mxu0 }
  0x8f   :  { %v152_v33 = vadd.f32 %v140_v32, %v94_v26 }
  0x91   :  { %164 = vrot.lane.b32.xlu2 %v152_v33, %s525_s15  ;;  %156 = vrot.lane.b32.xlu0 %v152_v33, %s526_s1  ;;  %v178_v37 = vmul.f32 %v177_v29, %v152_v33  ;;  %v201_v38 = vmul.f32 %v200_v30, %v152_v33  ;;  %v224_v39 = vmul.f32 %v223_v31, %v152_v33 }
  0x96   :  { %v143_v43 = vpop.f32.mrf.mxu0 }
  0x97   :  { %v153_v44 = vadd.f32 %v143_v43, %v95_v40 }
  0x99   :  { %158 = vrot.lane.b32.xlu1 %v153_v44, %s526_s1  ;;  %v179_v47 = vmul.f32 %v177_v29, %v153_v44  ;;  %v202_v48 = vmul.f32 %v200_v30, %v153_v44  ;;  %v225_v49 = vmul.f32 %v223_v31, %v153_v44 }
  0x9e   :  { %v146_v52 = vpop.f32.mrf.mxu0 }
  0x9f   :  { %v154_v53 = vadd.f32 %v146_v52, %v96_v50 }
  0xa1   :  { %160 = vrot.lane.b32.xlu1 %v154_v53, %s526_s1  ;;  %v180_v55 = vmul.f32 %v177_v29, %v154_v53  ;;  %v203_v56 = vmul.f32 %v200_v30, %v154_v53  ;;  %v226_v57 = vmul.f32 %v223_v31, %v154_v53 }
  0xa6   :  { %v149_v59 = vpop.f32.mrf.mxu0 }
  0xa7   :  { %v155_v60 = vadd.f32 %v149_v59, %v97_v58 }
  0xa9   :  { %168 = vrot.lane.b32.xlu1 %v154_v53, %s525_s15  ;;  %170 = vrot.lane.b32.xlu2 %v155_v60, %s525_s15  ;;  %v181_v61 = vmul.f32 %v177_v29, %v155_v60  ;;  %v204_v62 = vmul.f32 %v200_v30, %v155_v60  ;;  %v227_v63 = vmul.f32 %v223_v31, %v155_v60 }
  0xaa   :  { %162 = vrot.lane.b32.xlu0 %v155_v60, %s526_s1 }
  0xb2   :  { %166 = vrot.lane.b32.xlu0 %v153_v44, %s525_s15 }
  0xeb   :  { %v165_v5 = vpop.permute.xlu2 %164 }
  0xec   :  { %v187_v10 = vmul.f32 %v632_v3, %v165_v5  ;;  %v210_v11 = vmul.f32 %v634_v4, %v165_v5 }
 0x103   :  { %v157_v6 = vpop.permute.xlu0 %156 }
 0x104   :  { %v173_v7 = vmul.f32 %v172_v0, %v157_v6  ;;  %v196_v8 = vmul.f32 %v195_v1, %v157_v6  ;;  %v219_v9 = vmul.f32 %v218_v2, %v157_v6 }
 0x106   :  { %v182_v12 = vadd.f32 %v178_v37, %v173_v7  ;;  %v205_v15 = vadd.f32 %v201_v38, %v196_v8  ;;  %v228_v18 = vadd.f32 %v224_v39, %v219_v9  ;;  %v232_v37 = vperm.slane %v602_v17, 0  ;;  %v171_v38 = vpop.permute.xlu2 %170 }
 0x107   :  { %v190_v44 = vmul.f32 %v632_v3, %v171_v38 }
 0x108   :  { %v638_v19 = vadd.f32 %v187_v10, %v182_v12  ;;  %v214_v21 = vadd.f32 %v210_v11, %v205_v15  ;;  %v233_v39 = vmul.f32 %v232_v37, %v165_v5  ;;  %v236_v54 = vmul.f32 %v232_v37, %v171_v38 }
 0x10a   :  { %v237_v53 = vadd.f32 %v233_v39, %v228_v18  ;;  %v241_v7 = vrot.slane %v638_v19, 7 }
 0x10b   :  { %v159_v22 = vpop.permute.xlu1 %158 }
 0x10c   :  { %v174_v23 = vmul.f32 %v172_v0, %v159_v22  ;;  %v197_v26 = vmul.f32 %v195_v1, %v159_v22  ;;  %v220_v25 = vmul.f32 %v218_v2, %v159_v22 }
 0x10e   :  { %v183_v27 = vadd.f32 %v179_v47, %v174_v23  ;;  %v206_v29 = vadd.f32 %v202_v48, %v197_v26  ;;  %v229_v30 = vadd.f32 %v225_v49, %v220_v25  ;;  %v213_v49 = vmul.f32 %v634_v4, %v171_v38 }
 0x113   :  { %v161_v31 = vpop.permute.xlu1 %160 }
 0x114   :  { %v175_v32 = vmul.f32 %v172_v0, %v161_v31  ;;  %v198_v33 = vmul.f32 %v195_v1, %v161_v31  ;;  %v221_v34 = vmul.f32 %v218_v2, %v161_v31 }
 0x116   :  { %v184_v35 = vadd.f32 %v180_v55, %v175_v32  ;;  %v207_v40 = vadd.f32 %v203_v56, %v198_v33  ;;  %v230_v41 = vadd.f32 %v226_v57, %v221_v34 }
 0x11b   :  { %v169_v43 = vpop.permute.xlu1 %168 }
 0x11c   :  { %v189_v45 = vmul.f32 %v632_v3, %v169_v43  ;;  %v212_v46 = vmul.f32 %v634_v4, %v169_v43  ;;  %v235_v47 = vmul.f32 %v232_v37, %v169_v43  ;;  %v163_v48 = vpop.permute.xlu0 %162 }
 0x11d   :  { %v176_v50 = vmul.f32 %v172_v0, %v163_v48  ;;  %v199_v51 = vmul.f32 %v195_v1, %v163_v48  ;;  %v222_v52 = vmul.f32 %v218_v2, %v163_v48 }
 0x11e   :  { %v193_v55 = vadd.f32 %v189_v45, %v184_v35  ;;  %v216_v56 = vadd.f32 %v212_v46, %v207_v40  ;;  %v239_v57 = vadd.f32 %v235_v47, %v230_v41 }
 0x11f   :  { %v185_v58 = vadd.f32 %v181_v61, %v176_v50  ;;  %v208_v59 = vadd.f32 %v204_v62, %v199_v51  ;;  %v231_v60 = vadd.f32 %v227_v63, %v222_v52  ;;  %v266_v61 = vrot.slane %v237_v53, 1 }
 0x120   :  { %v243_v14 = vrot.slane %v193_v55, 7  ;;  %v268_v62 = vrot.slane %v239_v57, 1 }
 0x121   :  { %v194_v1 = vadd.f32 %v190_v44, %v185_v58  ;;  %v217_v2 = vadd.f32 %v213_v49, %v208_v59  ;;  %v240_v6 = vadd.f32 %v236_v54, %v231_v60 }
 0x123   :  { %v244_v63 = vrot.slane %v194_v1, 7  ;;  %v269_v8 = vrot.slane %v240_v6, 1 }
 0x124   :  { %v167_v9 = vpop.permute.xlu0 %166 }
 0x125   :  { %v246_v36 = vsel %vm245_vm3, %v243_v14, %v244_v63  ;;  %v249_v42 = vsel %vm245_vm3, %v244_v63, %v241_v7  ;;  %v271_v10 = vsel %vm270_vm4, %v268_v62, %v269_v8  ;;  %v274_v11 = vsel %vm270_vm4, %v269_v8, %v266_v61 }
 0x126   :  { %v258_v12 = vsel %vm647_vm1, %v249_v42, 0.0  ;;  %v265_v15 = vadd.f32 %v246_v36, %v217_v2  ;;  %v286_v18 = vsel %vm653_vm2, %v274_v11, 0.0  ;;  %v188_v19 = vmul.f32 %v632_v3, %v167_v9  ;;  %v427_v42 = vld [vmem:[%s783_s3 + $0x78] sm:$0xff] }
 0x127   :  { %v211_v22 = vmul.f32 %v634_v4, %v167_v9  ;;  %v234_v23 = vmul.f32 %v232_v37, %v167_v9  ;;  %v262_v26 = vadd.f32 %v258_v12, %v214_v21  ;;  %429 = vmatpush.msra.mxu1 %v427_v42  ;;  %470 = vmatpush.msra.mxu2 %v427_v42  ;;  %v425_v12 = vld [vmem:[%s783_s3 + $0x68] sm:$0xff] }
 0x128   :  { %v674_v25 = vadd.f32 %v286_v18, %v265_v15  ;;  %v192_v31 = vadd.f32 %v188_v19, %v183_v27  ;;  %471 = vmatpush.msra.mxu3 %v427_v42  ;;  %v424_v15 = vld [vmem:[%s783_s3 + $0x60] sm:$0xff]  ;;  %v423_v18 = vld [vmem:[%s783_s3 + $0x58] sm:$0xff]  ;;  %v422_v19 = vld [vmem:[%s783_s3 + $0x50] sm:$0xff] }
 0x129   :  { %v215_v32 = vadd.f32 %v211_v22, %v206_v29  ;;  %v238_v33 = vadd.f32 %v234_v23, %v229_v30  ;;  %v421_v23 = vld [vmem:[%s783_s3 + $0x48] sm:$0xff] }
 0x12a   :  { %v242_v34 = vrot.slane %v192_v31, 7  ;;  %v303_v45 = vmul.f32 %v674_v25, %v674_v25  ;;  %v420_v31 = vld [vmem:[%s783_s3 + $0x40] sm:$0xff] }
 0x12b   :  { %v267_v35 = vrot.slane %v238_v33, 1  ;;  %v419_v33 = vld [vmem:[%s783_s3 + $0x38] sm:$0xff] }
 0x12c   :  { %v247_v3 = vsel %vm245_vm3, %v242_v34, %v243_v14  ;;  %v248_v4 = vsel %vm245_vm3, %v241_v7, %v242_v34 }
 0x12d   :  { %v260_v21 = vsel %vm74_vm5, %v247_v3, 0.0  ;;  %v263_v40 = vadd.f32 %v248_v4, %v215_v32  ;;  %v272_v27 = vsel %vm270_vm4, %v267_v35, %v268_v62  ;;  %v273_v24 = vsel %vm270_vm4, %v266_v61, %v267_v35  ;;  %v418_v35 = vld [vmem:[%s783_s3 + $0x30] sm:$0xff]  ;;  %v417_v4 = vld [vmem:[%s783_s3 + $0x28] sm:$0xff] }
 0x12e   :  { %v264_v28 = vadd.f32 %v260_v21, %v216_v56  ;;  %v284_v29 = vsel %vm77_vm6, %v272_v27, 0.0  ;;  %v688_v30 = vadd.f32 %v273_v24, %v262_v26 }
 0x12f   :  { %v690_v16 = vadd.f32 %v284_v29, %v263_v40  ;;  %v416_v40 = vld [vmem:[%s783_s3 + $0x20] sm:$0xff] }
 0x130   :  { %v692_v20 = vadd.f32 %v271_v10, %v264_v28  ;;  %v300_v37 = vmul.f32 %v688_v30, %v688_v30  ;;  %v426_v10 = vld [vmem:[%s783_s3 + $0x70] sm:$0xff]  ;;  %v415_v28 = vld [vmem:[%s783_s3 + $0x18] sm:$0xff] }
 0x131   :  { %v291_v41 = vadd.f32 %v690_v16, %v688_v30  ;;  %v301_v38 = vmul.f32 %v690_v16, %v690_v16  ;;  %430 = vmatpush.msra.mxu1 %v426_v10  ;;  %472 = vmatpush.msra.mxu2 %v426_v10 }
 0x132   :  { %v302_v13 = vmul.f32 %v692_v20, %v692_v20  ;;  %473 = vmatpush.msra.mxu3 %v426_v10 }
 0x133   :  { %v304_v39 = vadd.f32 %v301_v38, %v300_v37  ;;  %v292_v43 = vadd.f32 %v291_v41, %v692_v20  ;;  %431 = vmatpush.msra.mxu1 %v425_v12  ;;  %474 = vmatpush.msra.mxu2 %v425_v12  ;;  %v414_v41 = vld [vmem:[%s783_s3 + $0x10] sm:$0xff]  ;;  %v413_v38 = vld [vmem:[%s783_s3 + $0x8] sm:$0xff] }
 0x134   :  { %475 = vmatpush.msra.mxu3 %v425_v12 }
 0x135   :  { %v293_v44 = vadd.f32 %v292_v43, %v674_v25  ;;  %v305_v46 = vadd.f32 %v304_v39, %v302_v13  ;;  %432 = vmatpush.msra.mxu1 %v424_v15  ;;  %476 = vmatpush.msra.mxu2 %v424_v15  ;;  %v412_v43 = vld [vmem:[%s783_s3] sm:$0xff] }
 0x136   :  { %477 = vmatpush.msra.mxu3 %v424_v15 }
 0x137   :  { %v294_v47 = vrot.slane %v293_v44, 4  ;;  %v306_v48 = vadd.f32 %v305_v46, %v303_v45  ;;  %433 = vmatpush.msra.mxu1 %v423_v18  ;;  %478 = vmatpush.msra.mxu2 %v423_v18 }
 0x138   :  { %479 = vmatpush.msra.mxu3 %v423_v18 }
 0x139   :  { %v295_v49 = vadd.f32 %v294_v47, %v293_v44  ;;  %v307_v50 = vrot.slane %v306_v48, 4  ;;  %434 = vmatpush.msra.mxu1 %v422_v19  ;;  %480 = vmatpush.msra.mxu2 %v422_v19 }
 0x13a   :  { %481 = vmatpush.msra.mxu3 %v422_v19 }
 0x13b   :  { %v296_v51 = vrot.slane %v295_v49, 2  ;;  %v308_v52 = vadd.f32 %v307_v50, %v306_v48  ;;  %435 = vmatpush.msra.mxu1 %v421_v23  ;;  %482 = vmatpush.msra.mxu2 %v421_v23 }
 0x13c   :  { %483 = vmatpush.msra.mxu3 %v421_v23 }
 0x13d   :  { %v297_v53 = vadd.f32 %v296_v51, %v295_v49  ;;  %v309_v54 = vrot.slane %v308_v52, 2  ;;  %436 = vmatpush.msra.mxu1 %v420_v31  ;;  %484 = vmatpush.msra.mxu2 %v420_v31 }
 0x13e   :  { %485 = vmatpush.msra.mxu3 %v420_v31 }
 0x13f   :  { %v298_v55 = vrot.slane %v297_v53, 1  ;;  %v310_v56 = vadd.f32 %v309_v54, %v308_v52  ;;  %437 = vmatpush.msra.mxu1 %v419_v33  ;;  %486 = vmatpush.msra.mxu2 %v419_v33 }
 0x140   :  { %487 = vmatpush.msra.mxu3 %v419_v33 }
 0x141   :  { %v311_v57 = vrot.slane %v310_v56, 1  ;;  %v299_v58 = vadd.f32 %v298_v55, %v297_v53  ;;  %438 = vmatpush.msra.mxu1 %v418_v35  ;;  %488 = vmatpush.msra.mxu2 %v418_v35 }
 0x142   :  { %489 = vmatpush.msra.mxu3 %v418_v35 }
 0x143   :  { %v312_v59 = vadd.f32 %v311_v57, %v310_v56  ;;  %439 = vmatpush.msra.mxu1 %v417_v4  ;;  %490 = vmatpush.msra.mxu2 %v417_v4 }
 0x144   :  { %491 = vmatpush.msra.mxu3 %v417_v4 }
 0x145   :  { %v314_v60 = vsel %vm313_vm7, %v299_v58, %v312_v59  ;;  %440 = vmatpush.msra.mxu1 %v416_v40  ;;  %492 = vmatpush.msra.mxu2 %v416_v40 }
 0x146   :  { %315 = vrot.lane.b32.xlu2 %v314_v60, %s526_s1  ;;  %493 = vmatpush.msra.mxu3 %v416_v40 }
 0x147   :  { %441 = vmatpush.msra.mxu1 %v415_v28  ;;  %494 = vmatpush.msra.mxu2 %v415_v28 }
 0x148   :  { %495 = vmatpush.msra.mxu3 %v415_v28 }
 0x149   :  { %442 = vmatpush.msra.mxu1 %v414_v41  ;;  %496 = vmatpush.msra.mxu2 %v414_v41 }
 0x14a   :  { %497 = vmatpush.msra.mxu3 %v414_v41 }
 0x14b   :  { %443 = vmatpush.msra.mxu1 %v413_v38  ;;  %498 = vmatpush.msra.mxu2 %v413_v38 }
 0x14c   :  { %499 = vmatpush.msra.mxu3 %v413_v38 }
 0x14d   :  { %444 = vmatpush.msra.mxu1 %v412_v43  ;;  %500 = vmatpush.msra.mxu2 %v412_v43 }
 0x14e   :  { %501 = vmatpush.msra.mxu3 %v412_v43 }
 0x1a0   :  { %v316_v5 = vpop.permute.xlu2 %315 }
 0x1a1   :  { %v317_v0 = vadd.f32 %v316_v5, %v314_v60 }
 0x1a3   :  { %318 = vrot.lane.b32.xlu0 %v317_v0, %s527_s16 }
 0x215   :  { %v319_v1 = vpop.permute.xlu0 %318 }
 0x216   :  { %v320_v2 = vadd.f32 %v319_v1, %v317_v0 }
 0x218   :  { %321 = vrot.lane.b32.xlu1 %v320_v2, %s528_s17 }
 0x28a   :  { %v322_v6 = vpop.permute.xlu1 %321 }
 0x28b   :  { %v323_v7 = vadd.f32 %v322_v6, %v320_v2 }
 0x28d   :  { %324 = vrot.lane.b32.xlu2 %v323_v7, %s529_s18 }
 0x2e7   :  { %v325_v61 = vpop.permute.xlu2 %324 }
 0x2e8   :  { %v326_v14 = vadd.f32 %v325_v61, %v323_v7 }
 0x2ea   :  { %v707_v62 = vmul.f32 0.001953125, %v326_v14 }
 0x2ec   :  { %v328_v63 = vmul.f32 %v707_v62, %v707_v62 }
 0x2ee   :  { %v330_v8 = vrot.slane %v328_v63, 7 }
 0x2f0   :  { %v332_v9 = vsub.f32 %v707_v62, %v330_v8 }
 0x2f2   :  { %v333_v36 = vmax.f32 %v332_v9, 0.0 }
 0x2f4   :  { %v334_v11 = vadd.f32 1e-05, %v333_v36 }
 0x2f6   :  { %507 = vrsqrt.f32 %v334_v11  ;;  %vm341_vm9 = vweird.f32 %v334_v11 }
 0x2fc   :  { %v508_v22 = vpop.eup %507 }
 0x2fd   :  { %v336_v26 = vmul.f32 %v508_v22, %v334_v11  ;;  %vm342_vm8 = vweird.f32 %v508_v22 }
 0x2fe   :  { %vm343_vm10 = vmor %vm341_vm9, %vm342_vm8 }
 0x2ff   :  { %v337_v32 = vmul.f32 %v508_v22, %v336_v26 }
 0x301   :  { %v338_v34 = vmul.f32 0.5, %v337_v32 }
 0x303   :  { %v339_v3 = vsub.f32 1.5, %v338_v34 }
 0x305   :  { %v340_v21 = vmul.f32 %v508_v22, %v339_v3 }
 0x307   :  { %v344_v27 = vsel %vm343_vm10, %v508_v22, %v340_v21 }
 0x308   :  { %v345_v24 = vmul.f32 %v344_v27, %v602_v17 }
 0x30a   :  { %v347_v29 = vrot.slane %v345_v24, 1  ;;  %v354_v13 = vperm.slane %v345_v24, 1 }
 0x30c   :  { %v349_v37 = vmul.f32 %v347_v29, %v707_v62  ;;  %v355_v45 = vmul.f32 %v354_v13, %v688_v30  ;;  %v356_v47 = vmul.f32 %v354_v13, %v690_v16  ;;  %v357_v48 = vmul.f32 %v354_v13, %v692_v20 }
 0x30d   :  { %v358_v49 = vmul.f32 %v354_v13, %v674_v25 }
 0x30e   :  { %v351_v39 = vrot.slane %v349_v37, 6  ;;  %v428_v37 = vperm.slane %v602_v17, 3 }
 0x310   :  { %v353_v44 = vsub.f32 %v602_v17, %v351_v39 }
 0x312   :  { %v359_v46 = vperm.slane %v353_v44, 2 }
 0x314   :  { %v360_v50 = vadd.f32 %v359_v46, %v355_v45  ;;  %v361_v51 = vadd.f32 %v359_v46, %v356_v47  ;;  %v362_v52 = vadd.f32 %v359_v46, %v357_v48  ;;  %v363_v53 = vadd.f32 %v359_v46, %v358_v49 }
 0x316   :  { %v364_v54 = vmin.f32 %v360_v50, 30.0  ;;  %v365_v55 = vmin.f32 %v361_v51, 30.0  ;;  %v366_v56 = vmin.f32 %v362_v52, 30.0  ;;  %v367_v57 = vmin.f32 %v363_v53, 30.0 }
 0x318   :  { %v368_v58 = vmul.f32 1.442695, %v364_v54  ;;  %v370_v59 = vmul.f32 1.442695, %v365_v55  ;;  %v372_v60 = vmul.f32 1.442695, %v366_v56 }
 0x319   :  { %v374_v30 = vmul.f32 1.442695, %v367_v57 }
 0x31a   :  { %509 = vpow2.f32 %v368_v58 }
 0x31b   :  { %511 = vpow2.f32 %v370_v59 }
 0x31c   :  { %513 = vpow2.f32 %v372_v60 }
 0x31d   :  { %515 = vpow2.f32 %v374_v30 }
 0x320   :  { %v510_v16 = vpop.eup %509 }
 0x321   :  { %v512_v20 = vpop.eup %511  ;;  %v376_v5 = vadd.f32 2.0, %v510_v16 }
 0x322   :  { %v514_v25 = vpop.eup %513  ;;  %v377_v0 = vadd.f32 2.0, %v512_v20 }
 0x323   :  { %v516_v1 = vpop.eup %515  ;;  %v380_v2 = vmul.f32 %v510_v16, %v376_v5  ;;  %v378_v6 = vadd.f32 2.0, %v514_v25 }
 0x324   :  { %v381_v7 = vmul.f32 %v512_v20, %v377_v0  ;;  %v379_v61 = vadd.f32 2.0, %v516_v1 }
 0x325   :  { %v384_v14 = vadd.f32 2.0, %v380_v2  ;;  %v382_v62 = vmul.f32 %v514_v25, %v378_v6 }
 0x326   :  { %v385_v63 = vadd.f32 2.0, %v381_v7  ;;  %v383_v8 = vmul.f32 %v516_v1, %v379_v61 }
 0x327   :  { %517 = vrcp.f32 %v384_v14  ;;  %v386_v9 = vadd.f32 2.0, %v382_v62 }
 0x328   :  { %519 = vrcp.f32 %v385_v63  ;;  %v387_v36 = vadd.f32 2.0, %v383_v8 }
 0x329   :  { %521 = vrcp.f32 %v386_v9 }
 0x32a   :  { %523 = vrcp.f32 %v387_v36 }
 0x32d   :  { %v518_v42 = vpop.eup %517 }
 0x32e   :  { %v520_v10 = vpop.eup %519  ;;  %v392_v11 = vmul.f32 %v518_v42, %v384_v14 }
 0x32f   :  { %v522_v12 = vpop.eup %521  ;;  %v393_v15 = vmul.f32 %v520_v10, %v385_v63 }
 0x330   :  { %v524_v18 = vpop.eup %523  ;;  %v396_v19 = vsub.f32 2.0, %v392_v11  ;;  %v394_v22 = vmul.f32 %v522_v12, %v386_v9 }
 0x331   :  { %v397_v23 = vsub.f32 2.0, %v393_v15  ;;  %v395_v26 = vmul.f32 %v524_v18, %v387_v36 }
 0x332   :  { %v400_v31 = vmul.f32 %v518_v42, %v396_v19  ;;  %v398_v32 = vsub.f32 2.0, %v394_v22 }
 0x333   :  { %v401_v33 = vmul.f32 %v520_v10, %v397_v23  ;;  %v399_v3 = vsub.f32 2.0, %v395_v26 }
 0x334   :  { %v404_v34 = vmul.f32 %v400_v31, %v380_v2  ;;  %v402_v35 = vmul.f32 %v522_v12, %v398_v32 }
 0x335   :  { %v405_v4 = vmul.f32 %v401_v33, %v381_v7  ;;  %v403_v28 = vmul.f32 %v524_v18, %v399_v3 }
 0x336   :  { %v408_v21 = vmul.f32 %v404_v34, %v360_v50  ;;  %v406_v40 = vmul.f32 %v402_v35, %v382_v62 }
 0x337   :  { %v409_v27 = vmul.f32 %v405_v4, %v361_v51  ;;  %v407_v29 = vmul.f32 %v403_v28, %v383_v8 }
 0x338   :  { %445 = vmatmul.f32.vlgmr.msra.gmra.mxu1 %v408_v21  ;;  %v410_v24 = vmul.f32 %v406_v40, %v362_v52 }
 0x339   :  { %448 = vmatmul.f32.vlgmr.msra.gmra.mxu2 %v409_v27  ;;  %v411_v41 = vmul.f32 %v407_v29, %v363_v53 }
 0x33a   :  { %451 = vmatmul.f32.vlgmr.msra.gmra.mxu3 %v410_v24 }
 0x342   :  { %454 = vmatmul.f32.gmra.mxu3 %v411_v41 }
 0x3b5   :  { %v446_v38 = vpop.f32.mrf.mxu1 }
 0x3b6   :  { %v447_v13 = vadd.f32 %v446_v38, %v428_v37 }
 0x3b8   :  { %458 = vst [vmem:[%s784_s4] sm:$0xff] %v447_v13 }
 0x3bc   :  { %v449_v39 = vpop.f32.mrf.mxu2 }
 0x3bd   :  { %v450_v43 = vadd.f32 %v449_v39, %v428_v37  ;;  %v452_v44 = vpop.f32.mrf.mxu3 }
 0x3be   :  { %v453_v45 = vadd.f32 %v452_v44, %v428_v37 }
 0x3bf   :  { %459 = vst [vmem:[%s784_s4 + $0x8] sm:$0xff] %v450_v43 }
 0x3c0   :  { %460 = vst [vmem:[%s784_s4 + $0x10] sm:$0xff] %v453_v45 }
 0x3c5   :  { %v455_v46 = vpop.f32.mrf.mxu3 }
 0x3c6   :  { %v456_v17 = vadd.f32 %v455_v46, %v428_v37 }
 0x3c8   :  { %461 = vst [vmem:[%s784_s4 + $0x18] sm:$0xff] %v456_v17 }

</bundles_post_ra>
